<compile_context>
chip_gen: v7x
topology: tpu7x:2x2x1
jax: 0.10.0
libtpu: 0.0.40
codegen_flags: <defaults>
</compile_context>

<pallas_src>
import functools

import jax
import jax.numpy as jnp
import numpy as np
from jax.experimental import pallas as pl
from jax.experimental.pallas import tpu as pltpu


def _project3d_kernel(p_ref, pts_ref, out_ref, *, eps, assume_w_one):
    # p_ref:   SMEM [B*12]          -- composed 3x4 projections, row-major
    # pts_ref: VMEM (1, C, R, 128)  -- C = 3 if assume_w_one else 4
    # out_ref: VMEM (1, 2, R, 128)
    b = pl.program_id(0)
    base = b * 12

    x = pts_ref[0, 0, :, :]                 # (R, 128) dense vreg slabs
    y = pts_ref[0, 1, :, :]
    z = pts_ref[0, 2, :, :]
    w = None if assume_w_one else pts_ref[0, 3, :, :]

    def proj_row(r):
        # Scalar-broadcast FMAs on the VPU; scalars come from SMEM.
        acc = p_ref[base + 4 * r + 0] * x
        acc = acc + p_ref[base + 4 * r + 1] * y
        acc = acc + p_ref[base + 4 * r + 2] * z
        if assume_w_one:
            acc = acc + p_ref[base + 4 * r + 3]        # w == 1 contract
        else:
            acc = acc + p_ref[base + 4 * r + 3] * w
        return acc

    cx = proj_row(0)                        # already scaled by 2/(W-1)
    cy = proj_row(1)                        # already scaled by 2/(H-1)
    cz = proj_row(2)                        # unscaled depth row

    inv_z = pl.reciprocal(cz + eps)         # exact (approx=False), EUP slot

    out_ref[0, 0, :, :] = (cx * inv_z - 1.0).astype(out_ref.dtype)
    out_ref[0, 1, :, :] = (cy * inv_z - 1.0).astype(out_ref.dtype)


def project3d(points, K, T, *, height, width, eps=1e-7, tile_elems=32768,
              assume_w_one=True, output_bhwc=False):
    """Pallas port of Project3D.forward.

    points: [B, 4, H*W] homogeneous points (row 3 == 1 when assume_w_one=True,
            which is the BackprojectDepth contract).
    K:      [B, 3, 3] intrinsics.  T: [B, 4, 4] pose.

    Returns [B, 2, H, W] (lane-dense, preferred for fusing with a downstream
    resampler) or the module's [B, H, W, 2] layout when output_bhwc=True
    (costs an extra full HBM transpose pass).
    """
    B, four, N = points.shape
    assert four == 4 and N == height * width

    # Precompose projection and fold pixel normalization into rows 0 and 1:
    #   out_x = (2/(W-1)) * (P @ pt)_0 / ((P @ pt)_2 + eps) - 1, etc.
    P = jnp.einsum("bij,bjk->bik", K.astype(jnp.float32),
                   T[:, :3, :].astype(jnp.float32))                 # [B, 3, 4]
    scale = jnp.array([2.0 / (width - 1), 2.0 / (height - 1), 1.0],
                      dtype=jnp.float32)
    P = (P * scale[None, :, None]).reshape(B * 12)                  # flat SMEM

    # Sublane-dense view: need N a multiple of 128; pad otherwise (extra copy,
    # only taken for odd image sizes).
    pad = (-N) % 128
    if pad:
        points = jnp.pad(points, ((0, 0), (0, 0), (0, pad)),
                         constant_values=1.0)
    n_pad = N + pad
    rows = n_pad // 128
    pts4d = points.reshape(B, 4, rows, 128)

    n_chan = 3 if assume_w_one else 4       # skip the constant ones row

    # Tile: as many 128-lane rows per grid step as reasonable; multiple of 8
    # sublanes unless it covers the full row extent (ragged tail via cdiv).
    tile_rows = max(8, tile_elems // 128)
    tile_rows = min(tile_rows, rows)
    if tile_rows < rows:
        tile_rows = max(8, (tile_rows // 8) * 8)
    grid_n = pl.cdiv(rows, tile_rows)
    if B * grid_n < 2 and rows >= 16:
        # Keep >= 2 parallel grid points so both v7x TensorCores get work.
        tile_rows = (((rows + 1) // 2) + 7) // 8 * 8
        grid_n = pl.cdiv(rows, tile_rows)

    out_dtype = jnp.float32   # sub-pixel coords: keep f32 even for bf16 points
    in_bytes = n_chan * np.dtype(points.dtype).itemsize
    out_bytes = 2 * np.dtype(out_dtype).itemsize
    cost = pl.CostEstimate(
        flops=22 * B * n_pad,
        transcendentals=B * n_pad,
        bytes_accessed=B * n_pad * (in_bytes + out_bytes),
    )

    kernel = functools.partial(_project3d_kernel, eps=float(eps),
                               assume_w_one=assume_w_one)
    out4d = pl.pallas_call(
        kernel,
        out_shape=jax.ShapeDtypeStruct((B, 2, rows, 128), out_dtype),
        grid_spec=pl.GridSpec(
            grid=(B, grid_n),
            in_specs=[
                # Composed projections: whole flat array in SMEM, scalar reads.
                pl.BlockSpec(memory_space=pltpu.MemorySpace.SMEM),
                # Lane/sublane-dense point tiles; channel block of 3 skips the
                # constant w row's HBM traffic entirely.
                pl.BlockSpec((1, n_chan, tile_rows, 128),
                             lambda b, n: (b, 0, n, 0)),
            ],
            out_specs=pl.BlockSpec((1, 2, tile_rows, 128),
                                   lambda b, n: (b, 0, n, 0)),
        ),
        compiler_params=pltpu.CompilerParams(
            dimension_semantics=("parallel", "parallel")),
        cost_estimate=cost,
    )(P, pts4d)

    out = out4d.reshape(B, 2, n_pad)
    if pad:
        out = out[:, :, :N]

    # TODO(synk): the PyTorch module also stashes the pre-normalization pixel
    # coords via set_original_pix_coords (stateful side effect, not returned);
    # expose it as a second kernel output if downstream code needs it.

    if output_bhwc:
        # Module layout [B, H, W, 2] — graph-level glue, extra HBM pass.
        return out.reshape(B, 2, height, width).transpose(0, 2, 3, 1)
    return out.reshape(B, 2, height, width)


def _reference(points, K, T, *, height, width, eps=1e-7):
    # Literal port of the PyTorch module's forward.
    cam = jnp.einsum("bij,bjn->bin", T, points)
    cam = jnp.einsum("bij,bjn->bin", K, cam[:, :3, :])
    pix = cam[:, :2, :] / (cam[:, 2:3, :] + eps)
    B = points.shape[0]
    pix = pix.reshape(B, 2, height, width).transpose(0, 2, 3, 1)
    pix = pix.at[..., 0].divide(width - 1)
    pix = pix.at[..., 1].divide(height - 1)
    return (pix - 0.5) * 2


if __name__ == "__main__":
    B, H, W = 2, 16, 16
    N = H * W
    key = jax.random.PRNGKey(0)
    k1, k2, k3 = jax.random.split(key, 3)

    # Homogeneous 3D points: x,y in [-1,1], z in [1,2], w = 1.
    xy = jax.random.uniform(k1, (B, 2, N), jnp.float32, -1.0, 1.0)
    z = jax.random.uniform(k2, (B, 1, N), jnp.float32, 1.0, 2.0)
    ones = jnp.ones((B, 1, N), jnp.float32)
    points = jnp.concatenate([xy, z, ones], axis=1)                 # [B, 4, N]

    # Intrinsics K [B,3,3] and pose T [B,4,4] (identity + small perturbation).
    K = jnp.tile(
        jnp.array([[0.58 * W, 0.0, 0.5 * W],
                   [0.0, 1.92 * H, 0.5 * H],
                   [0.0, 0.0, 1.0]], jnp.float32)[None], (B, 1, 1))
    T = (jnp.tile(jnp.eye(4, dtype=jnp.float32)[None], (B, 1, 1))
         + 0.01 * jax.random.normal(k3, (B, 4, 4), jnp.float32))

    out = project3d(points, K, T, height=H, width=W)                # [B,2,H,W]
    out = jax.block_until_ready(out)

    ref = _reference(points, K, T, height=H, width=W)               # [B,H,W,2]
    ref_np = np.asarray(ref)
    out_np = np.asarray(out)

    np.testing.assert_allclose(out_np, ref_np.transpose(0, 3, 1, 2),
                               rtol=2e-5, atol=2e-5)
    # Same values, module layout (graph-level permute of the kernel output).
    np.testing.assert_allclose(out_np.transpose(0, 2, 3, 1), ref_np,
                               rtol=2e-5, atol=2e-5)
    print("KERNEL_OK")
</pallas_src>

<mosaic_0001>
module attributes {stable_mosaic.version = 11 : i64} {
  func.func @_project3d_kernel(%arg0: i32, %arg1: i32, %arg2: memref<24xf32, #tpu.memory_space<smem>>, %arg3: memref<1x3x2x128xf32, #tpu.memory_space<vmem>>, %arg4: memref<1x2x2x128xf32, #tpu.memory_space<vmem>>) attributes {dimension_semantics = [#tpu.dimension_semantics<parallel>, #tpu.dimension_semantics<parallel>], iteration_bounds = array<i64: 2, 1>, scalar_prefetch = 0 : i64, scratch_operands = 0 : i64, tpu.core_type = #tpu.core_type<tc>, window_params = [{transform_indices = @transform_0, window_bounds = array<i64: 24>}, {transform_indices = @transform_1, window_bounds = array<i64: 1, 3, 2, 128>}, {transform_indices = @transform_2, window_bounds = array<i64: 1, 2, 2, 128>}]} {
    %c12_i32 = arith.constant 12 : i32
    %0 = arith.muli %arg0, %c12_i32 : i32
    %c0 = arith.constant 0 : index
    %c0_0 = arith.constant 0 : index
    %c0_1 = arith.constant 0 : index
    %c0_2 = arith.constant 0 : index
    %1 = vector.load %arg3[%c0, %c0_0, %c0_1, %c0_2] : memref<1x3x2x128xf32, #tpu.memory_space<vmem>>, vector<1x1x2x128xf32>
    %2 = vector.shape_cast %1 : vector<1x1x2x128xf32> to vector<2x128xf32>
    %c0_3 = arith.constant 0 : index
    %c1 = arith.constant 1 : index
    %c0_4 = arith.constant 0 : index
    %c0_5 = arith.constant 0 : index
    %3 = vector.load %arg3[%c0_3, %c1, %c0_4, %c0_5] : memref<1x3x2x128xf32, #tpu.memory_space<vmem>>, vector<1x1x2x128xf32>
    %4 = vector.shape_cast %3 : vector<1x1x2x128xf32> to vector<2x128xf32>
    %c0_6 = arith.constant 0 : index
    %c2 = arith.constant 2 : index
    %c0_7 = arith.constant 0 : index
    %c0_8 = arith.constant 0 : index
    %5 = vector.load %arg3[%c0_6, %c2, %c0_7, %c0_8] : memref<1x3x2x128xf32, #tpu.memory_space<vmem>>, vector<1x1x2x128xf32>
    %6 = vector.shape_cast %5 : vector<1x1x2x128xf32> to vector<2x128xf32>
    %c0_i32 = arith.constant 0 : i32
    %7 = arith.addi %0, %c0_i32 : i32
    %c0_i32_9 = arith.constant 0 : i32
    %8 = arith.addi %7, %c0_i32_9 : i32
    %9 = arith.index_cast %8 : i32 to index
    %10 = memref.load %arg2[%9] : memref<24xf32, #tpu.memory_space<smem>>
    %11 = vector.broadcast %10 : f32 to vector<2x128xf32>
    %12 = arith.mulf %11, %2 : vector<2x128xf32>
    %c0_i32_10 = arith.constant 0 : i32
    %13 = arith.addi %0, %c0_i32_10 : i32
    %c1_i32 = arith.constant 1 : i32
    %14 = arith.addi %13, %c1_i32 : i32
    %15 = arith.index_cast %14 : i32 to index
    %16 = memref.load %arg2[%15] : memref<24xf32, #tpu.memory_space<smem>>
    %17 = vector.broadcast %16 : f32 to vector<2x128xf32>
    %18 = arith.mulf %17, %4 : vector<2x128xf32>
    %19 = arith.addf %12, %18 : vector<2x128xf32>
    %c0_i32_11 = arith.constant 0 : i32
    %20 = arith.addi %0, %c0_i32_11 : i32
    %c2_i32 = arith.constant 2 : i32
    %21 = arith.addi %20, %c2_i32 : i32
    %22 = arith.index_cast %21 : i32 to index
    %23 = memref.load %arg2[%22] : memref<24xf32, #tpu.memory_space<smem>>
    %24 = vector.broadcast %23 : f32 to vector<2x128xf32>
    %25 = arith.mulf %24, %6 : vector<2x128xf32>
    %26 = arith.addf %19, %25 : vector<2x128xf32>
    %c0_i32_12 = arith.constant 0 : i32
    %27 = arith.addi %0, %c0_i32_12 : i32
    %c3_i32 = arith.constant 3 : i32
    %28 = arith.addi %27, %c3_i32 : i32
    %29 = arith.index_cast %28 : i32 to index
    %30 = memref.load %arg2[%29] : memref<24xf32, #tpu.memory_space<smem>>
    %31 = vector.broadcast %30 : f32 to vector<2x128xf32>
    %32 = arith.addf %26, %31 : vector<2x128xf32>
    %c4_i32 = arith.constant 4 : i32
    %33 = arith.addi %0, %c4_i32 : i32
    %c0_i32_13 = arith.constant 0 : i32
    %34 = arith.addi %33, %c0_i32_13 : i32
    %35 = arith.index_cast %34 : i32 to index
    %36 = memref.load %arg2[%35] : memref<24xf32, #tpu.memory_space<smem>>
    %37 = vector.broadcast %36 : f32 to vector<2x128xf32>
    %38 = arith.mulf %37, %2 : vector<2x128xf32>
    %c4_i32_14 = arith.constant 4 : i32
    %39 = arith.addi %0, %c4_i32_14 : i32
    %c1_i32_15 = arith.constant 1 : i32
    %40 = arith.addi %39, %c1_i32_15 : i32
    %41 = arith.index_cast %40 : i32 to index
    %42 = memref.load %arg2[%41] : memref<24xf32, #tpu.memory_space<smem>>
    %43 = vector.broadcast %42 : f32 to vector<2x128xf32>
    %44 = arith.mulf %43, %4 : vector<2x128xf32>
    %45 = arith.addf %38, %44 : vector<2x128xf32>
    %c4_i32_16 = arith.constant 4 : i32
    %46 = arith.addi %0, %c4_i32_16 : i32
    %c2_i32_17 = arith.constant 2 : i32
    %47 = arith.addi %46, %c2_i32_17 : i32
    %48 = arith.index_cast %47 : i32 to index
    %49 = memref.load %arg2[%48] : memref<24xf32, #tpu.memory_space<smem>>
    %50 = vector.broadcast %49 : f32 to vector<2x128xf32>
    %51 = arith.mulf %50, %6 : vector<2x128xf32>
    %52 = arith.addf %45, %51 : vector<2x128xf32>
    %c4_i32_18 = arith.constant 4 : i32
    %53 = arith.addi %0, %c4_i32_18 : i32
    %c3_i32_19 = arith.constant 3 : i32
    %54 = arith.addi %53, %c3_i32_19 : i32
    %55 = arith.index_cast %54 : i32 to index
    %56 = memref.load %arg2[%55] : memref<24xf32, #tpu.memory_space<smem>>
    %57 = vector.broadcast %56 : f32 to vector<2x128xf32>
    %58 = arith.addf %52, %57 : vector<2x128xf32>
    %c8_i32 = arith.constant 8 : i32
    %59 = arith.addi %0, %c8_i32 : i32
    %c0_i32_20 = arith.constant 0 : i32
    %60 = arith.addi %59, %c0_i32_20 : i32
    %61 = arith.index_cast %60 : i32 to index
    %62 = memref.load %arg2[%61] : memref<24xf32, #tpu.memory_space<smem>>
    %63 = vector.broadcast %62 : f32 to vector<2x128xf32>
    %64 = arith.mulf %63, %2 : vector<2x128xf32>
    %c8_i32_21 = arith.constant 8 : i32
    %65 = arith.addi %0, %c8_i32_21 : i32
    %c1_i32_22 = arith.constant 1 : i32
    %66 = arith.addi %65, %c1_i32_22 : i32
    %67 = arith.index_cast %66 : i32 to index
    %68 = memref.load %arg2[%67] : memref<24xf32, #tpu.memory_space<smem>>
    %69 = vector.broadcast %68 : f32 to vector<2x128xf32>
    %70 = arith.mulf %69, %4 : vector<2x128xf32>
    %71 = arith.addf %64, %70 : vector<2x128xf32>
    %c8_i32_23 = arith.constant 8 : i32
    %72 = arith.addi %0, %c8_i32_23 : i32
    %c2_i32_24 = arith.constant 2 : i32
    %73 = arith.addi %72, %c2_i32_24 : i32
    %74 = arith.index_cast %73 : i32 to index
    %75 = memref.load %arg2[%74] : memref<24xf32, #tpu.memory_space<smem>>
    %76 = vector.broadcast %75 : f32 to vector<2x128xf32>
    %77 = arith.mulf %76, %6 : vector<2x128xf32>
    %78 = arith.addf %71, %77 : vector<2x128xf32>
    %c8_i32_25 = arith.constant 8 : i32
    %79 = arith.addi %0, %c8_i32_25 : i32
    %c3_i32_26 = arith.constant 3 : i32
    %80 = arith.addi %79, %c3_i32_26 : i32
    %81 = arith.index_cast %80 : i32 to index
    %82 = memref.load %arg2[%81] : memref<24xf32, #tpu.memory_space<smem>>
    %83 = vector.broadcast %82 : f32 to vector<2x128xf32>
    %84 = arith.addf %78, %83 : vector<2x128xf32>
    %cst = arith.constant 1.000000e-07 : f32
    %85 = vector.broadcast %cst : f32 to vector<2x128xf32>
    %86 = arith.addf %84, %85 : vector<2x128xf32>
    %87 = tpu.reciprocal %86 : vector<2x128xf32> -> vector<2x128xf32>
    %88 = arith.mulf %32, %87 : vector<2x128xf32>
    %cst_27 = arith.constant 1.000000e+00 : f32
    %89 = vector.broadcast %cst_27 : f32 to vector<2x128xf32>
    %90 = arith.subf %88, %89 : vector<2x128xf32>
    %c0_28 = arith.constant 0 : index
    %c0_29 = arith.constant 0 : index
    %c0_30 = arith.constant 0 : index
    %c0_31 = arith.constant 0 : index
    %91 = vector.load %arg4[%c0_28, %c0_29, %c0_30, %c0_31] : memref<1x2x2x128xf32, #tpu.memory_space<vmem>>, vector<1x1x2x128xf32>
    %92 = vector.shape_cast %91 : vector<1x1x2x128xf32> to vector<2x128xf32>
    %93 = vector.shape_cast %90 : vector<2x128xf32> to vector<1x1x2x128xf32>
    tpu.vector_store %arg4[%c0_28, %c0_29, %c0_30, %c0_31], %93 {strides = array<i32>} : memref<1x2x2x128xf32, #tpu.memory_space<vmem>>, vector<1x1x2x128xf32>,
    %94 = arith.mulf %58, %87 : vector<2x128xf32>
    %cst_32 = arith.constant 1.000000e+00 : f32
    %95 = vector.broadcast %cst_32 : f32 to vector<2x128xf32>
    %96 = arith.subf %94, %95 : vector<2x128xf32>
    %c0_33 = arith.constant 0 : index
    %c1_34 = arith.constant 1 : index
    %c0_35 = arith.constant 0 : index
    %c0_36 = arith.constant 0 : index
    %97 = vector.load %arg4[%c0_33, %c1_34, %c0_35, %c0_36] : memref<1x2x2x128xf32, #tpu.memory_space<vmem>>, vector<1x1x2x128xf32>
    %98 = vector.shape_cast %97 : vector<1x1x2x128xf32> to vector<2x128xf32>
    %99 = vector.shape_cast %96 : vector<2x128xf32> to vector<1x1x2x128xf32>
    tpu.vector_store %arg4[%c0_33, %c1_34, %c0_35, %c0_36], %99 {strides = array<i32>} : memref<1x2x2x128xf32, #tpu.memory_space<vmem>>, vector<1x1x2x128xf32>,
    return
  }
  func.func @transform_0(%arg0: i32, %arg1: i32) -> i32 {
    %c0_i32 = arith.constant 0 : i32
    %c0_i32_0 = arith.constant 0 : i32
    return %c0_i32 : i32
  }
  func.func @transform_1(%arg0: i32, %arg1: i32) -> (i32, i32, i32, i32) {
    %c0_i32 = arith.constant 0 : i32
    %c0_i32_0 = arith.constant 0 : i32
    %c0_i32_1 = arith.constant 0 : i32
    return %arg0, %c0_i32, %arg1, %c0_i32_0 : i32, i32, i32, i32
  }
  func.func @transform_2(%arg0: i32, %arg1: i32) -> (i32, i32, i32, i32) {
    %c0_i32 = arith.constant 0 : i32
    %c0_i32_0 = arith.constant 0 : i32
    %c0_i32_1 = arith.constant 0 : i32
    return %arg0, %c0_i32, %arg1, %c0_i32_0 : i32, i32, i32, i32
  }
}

</mosaic_0001>

<bundles_post_ra>
// kernel: tpu_custom_call.1
= control target key start
LH: loop header
LB: loop body
LE: loop exit
PB: predicated region body
PF: predicated region fallthrough
CT: control target
= control target key end

     0   :  { %7 = vsyncpa [#allocation5], 0  ;;  %s856_s0 = inlined_call_operand.hbm [shape: f32[24], index: 0, kind: input, shape index: {}]   ;;  %s857_s1 = inlined_call_operand.hbm [shape: f32[2,4,2,128], index: 1, kind: input, shape index: {}]   ;;  %s858_s2 = inlined_call_operand.hbm [shape: f32[2,2,2,128], index: 2, kind: output, shape index: {}]  }
   0x1   :  { %8 = vsyncpa [#allocation3], 0 }
   0x2   :  { %10 = vsyncpa [#allocation3 + $0x1], 0 }
   0x3   :  { %11 = vsyncpa [#allocation4], 0 }
   0x4   :  { %13 = vsyncpa [#allocation4 + $0x1], 0  ;;  %s627_s9 = smov 0   ;;  %s629_s10 = smov 0  }
   0x5   :  { %s631_s11 = smov 0   ;;  %s633_s12 = smov 0  }
   0x6   :  { %s635_s13 = smov 0   ;;  %s637_s14 = smov 0  }
   0x7 LB: > { %s371_s15 = sadd.s32 4294967295, %s603_s14   ;;  %s372_s16 = sadd.s32 4294967294, %s603_s14   ;;  %s603_s14 = sphi %s637_s14, %s19_s14   ;;  %s599_s13 = sphi %s635_s13, %s878_s13   ;;  %s595_s12 = sphi %s633_s12, %s877_s12   ;;  %s591_s11 = sphi %s631_s11, %s876_s11   ;;  %s587_s10 = sphi %s629_s10, %s875_s10   ;;  %s583_s9 = sphi %s627_s9, %s874_s9  }
   0x8   : > { %s61_s17 = sadd.s32 1, %s591_s11  ;;  %p68_p0 = scmp.ne.s32.totalorder %s591_s11, %s587_s10 }
   0x9   : > { %p69_p1 = scmp.eq.s32.totalorder %s603_s14, 0  ;;  %p74_p2 = scmp.ne.s32.totalorder %s587_s10, %s583_s9 }
   0xa   : > { %p665_p3 = scmp.eq.s32.totalorder %s371_s15, 0  ;;  %p100_p4 = scmp.eq.s32.totalorder %s371_s15, 1 }
   0xb   : > { %p70_p5 = por %p69_p1, %p68_p0  ;;  %p106_p6 = scmp.eq.s32.totalorder %s372_s16, 1 }
   0xc   : > { %s863_s18 = scalar_select %p665_p3, 1, 0 }
   0xd   : > { %p671_p7 = por %p665_p3, %p74_p2  ;;  %p675_p8 = por %p100_p4, %p68_p0 }
   0xe   : > { %p679_p9 = por %p106_p6, %p74_p2  ;;  %p373_p10 = scmp.ge.s32.totalorder %s603_s14, 1 }
   0xf   : > { %s864_s19 = scalar_select %p671_p7, 1, 0 }
  0x10   : > { %s865_s20 = scalar_select %p675_p8, 1, 0 }
  0x11   : > { %s866_s21 = scalar_select %p679_p9, 1, 0 }
  0x12   : > { %p113_p11 = scmp.lt.s32.totalorder %s603_s14, 3  ;;  %p416_p1 = scmp.lt.s32.totalorder %s603_s14, 2 }
  0x13   : > { %s135_s23 = sand.u32 1, %s591_s11   ;;  %s31_s25 = sadd.s32 1, %s599_s13 }
  0x14   : > { %p686_p13 = pnand %p373_p10, %p113_p11  ;;  %p694_p0 = pnand %p416_p1, %p70_p5 }
  0x15   : > { %s393_s26 = smul.u32 6, %s135_s23  ;;  %p33_p4 = scmp.ge.s32.totalorder %s31_s25, 2 }
  0x16   : > { %p403_p7 = pneg %p686_p13  ;;  %s474_s29 = scalar_lea.hbm %s856_s0, 16 }
  0x17   : > { %p475_p6 = scmp.ne.s32.totalorder %s856_s0, %s474_s29  ;;  %p481_p5 = scmp.lt.u32.totalorder %s474_s29, %s856_s0 }
  0x18   : > { %p404_p2 = pnand %p403_p7, %p665_p3 }
  0x1a   : > { %p476_p10 = pneg %p404_p2 }
  0x1c   : > { %p477_p11 = pnand %p476_p10, %p475_p6 }
  0x1e   : > { %p478_p12 = pneg %p477_p11 }
  0x20   : > { %p483_p1 = pnand %p481_p5, %p478_p12 }
  0x22   : > { %486 = shalt.err (!%p483_p1)
}
  0x23   : > { %s605_s6 = smov [#allocation2]   ;;  %s880_s25 = smov (%p33_p4, %s31_s25), 0 }
  0x24   : > { %406 = dma.hbm_to_smem (!%p404_p2), %s856_s0, 16, %s605_s6, [#allocation5]  }
  0x25   : > { %s391_s15 = sshll.u32 %s599_s13, 7  ;;  %s56_s16 = ssub.s32 %s599_s13, %s880_s25 }
  0x26   : > { %s721_s29 = scalar_lea.hbm %s857_s1, %s391_s15  ;;  %p59_p7 = scmp.eq.s32.totalorder %s56_s16, 0 }
  0x27   : > { %s139_s30 = scalar_lea.vmem [#allocation6], %s393_s26  ;;  %s730_s5 = scalar_lea.sflag [#allocation3], %s135_s23 }
  0x28   : > { %s147_s3 = sshll.u32 %s139_s30, 4  ;;  %s487_s6 = scalar_lea.hbm %s721_s29, 96  ;;  %s723_s3 = int_to_ptr.vmem [resolvable:$true] %s147_s3 }
  0x29   : > { %s728_s4 = scalar_select %p59_p7, %s591_s11, %s61_s17  }
  0x2a   : > { %p488_p12 = scmp.ne.s32.totalorder %s721_s29, %s487_s6  ;;  %p489_p2 = pneg %p694_p0 }
  0x2b   : > { %s492_s26 = scalar_lea.hbm %s857_s1, 256  ;;  %p493_p10 = scmp.lt.u32.totalorder %s721_s29, %s857_s1 }
  0x2c   : > { %p490_p4 = pnand %p489_p2, %p488_p12  ;;  %p494_p11 = scmp.lt.u32.totalorder %s492_s26, %s487_s6 }
  0x2d   : > { %p496_p1 = scmp.lt.u32.totalorder %s487_s6, %s721_s29 }
  0x2e   : > { %p491_p6 = pneg %p490_p4  ;;  %p495_p5 = por %p494_p11, %p493_p10 }
  0x30   : > { %p497_p7 = por %p496_p1, %p495_p5 }
  0x32   : > { %p498_p9 = pnand %p497_p7, %p491_p6 }
  0x34   : > { %501 = shalt.err (!%p498_p9)
}
  0x35   : > { %s502_s17 = scalar_lea.vmem %s723_s3, 96  ;;  %s606_s23 = smov [#allocation6]  }
  0x36   : > { %p503_p12 = scmp.ne.s32.totalorder %s723_s3, %s502_s17  ;;  %s507_s27 = sshll.u32 %s606_s23, 4  ;;  %s508_s27 = int_to_ptr.vmem [resolvable:$false] %s507_s27 }
  0x37   : > { %s509_s28 = scalar_lea.vmem %s508_s27, 192  ;;  %p510_p3 = scmp.lt.s32.totalorder %s723_s3, %s508_s27 }
  0x38   : > { %p505_p4 = pnand %p503_p12, %p489_p2  ;;  %p511_p10 = scmp.lt.s32.totalorder %s509_s28, %s502_s17 }
  0x3a   : > { %p506_p8 = pneg %p505_p4  ;;  %p512_p11 = por %p511_p10, %p510_p3 }
  0x3c   : > { %p513_p5 = pnand %p512_p11, %p506_p8 }
  0x3e   : > { %516 = shalt.err (!%p513_p5)
}
  0x3f   : > { %s607_s30 = smov 32   ;;  %s608_s6 = smov 2  }
  0x40   : > { %410 = dma.hbm_to_vmem [thread:$0]  (!%p694_p0), %s721_s29, 96, %s723_s3, %s730_s5, %s607_s30, %s607_s30, %s608_s6  }
  0x41   : > { %159 = sbr.rel (%p686_p13) target bundleno = 133 (0x85), region = 28  ;;  %p869_p9 = scmp.ne.s32.totalorder (!%p686_p13), %s863_s18, 0 }
  0x48   : > { %570 = dma.done.wait (%p869_p9), [#allocation5], 16  }
  0x49   : > { %572 = vsyncadd (%p869_p9), [#allocation5], 4294967280  ;;  %s765_s7 = sand.u32 1, %s587_s10   ;;  %p870_p3 = scmp.ne.s32.totalorder %s864_s19, 0 }
  0x4a   : > { %s394_s8 = smul.u32 6, %s765_s7  ;;  %s166_s26 = scalar_lea.sflag [#allocation3], %s765_s7 }
  0x4c   : > { %s169_s15 = scalar_lea.vmem [#allocation6], %s394_s8 }
  0x4d   : > { %574 = dma.done.wait (%p870_p3), %s166_s26, 96  }
  0x4e   : > { %576 = vsyncadd (%p870_p3), %s166_s26, 4294967200 }
  0x4f   : > { %174 = sfence }
  0x50   : > { %s774_s22 = smul.u32 12, %s595_s12  ;;  %v192_v0 = vld [vmem:[%s169_s15] sm:$0x3]  ;;  %v381_v1 = vld [vmem:[%s169_s15 + $0x2] sm:$0x3]  ;;  %p871_p13 = scmp.ne.s32.totalorder %s865_s20, 0 }
  0x51   : > { %v382_v2 = vld [vmem:[%s169_s15 + $0x4] sm:$0x3] }
  0x52   : > { %s200_s18 = sadd.s32 1, %s774_s22  ;;  %s778_s24 = sld [smem:[#allocation2 + %s774_s22]] }
  0x53   : > { %s780_s29 = sld [smem:[#allocation2 + %s200_s18]]  ;;  %s205_s19 = sadd.s32 2, %s774_s22 }
  0x54   : > { %s232_s3 = sadd.s32 8, %s774_s22  ;;  %s236_s16 = sadd.s32 9, %s774_s22 }
  0x55   : > { %s233_s5 = sld [smem:[#allocation2 + %s232_s3]]  ;;  %s241_s23 = sadd.s32 10, %s774_s22 }
  0x56   : > { %s237_s17 = sld [smem:[#allocation2 + %s236_s16]]  ;;  %s246_s28 = sadd.s32 11, %s774_s22 }
  0x57   : > { %s242_s27 = sld [smem:[#allocation2 + %s241_s23]]  ;;  %s214_s8 = sadd.s32 4, %s774_s22 }
  0x58   : > { %s787_s30 = sld [smem:[#allocation2 + %s246_s28]]  ;;  %s218_s18 = sadd.s32 5, %s774_s22  ;;  %v198_v9 = vstv %s778_s24 }
  0x59   : > { %s789_s6 = sld [smem:[#allocation2 + %s205_s19]]  ;;  %s223_s16 = sadd.s32 6, %s774_s22  ;;  %v202_v10 = vstv %s780_s29  ;;  %v199_v16 = vmul.f32 %v198_v9, %v192_v0 }
  0x5a   : > { %s215_s26 = sld [smem:[#allocation2 + %s214_s8]]  ;;  %s210_s19 = sadd.s32 3, %s774_s22  ;;  %v203_v17 = vmul.f32 %v381_v1, %v202_v10 }
  0x5b   : > { %v234_v3 = vstv %s233_s5  ;;  %s219_s3 = sld [smem:[#allocation2 + %s218_s18]]  ;;  %s228_s28 = sadd.s32 7, %s774_s22 }
  0x5c   : > { %v235_v4 = vmul.f32 %v234_v3, %v192_v0  ;;  %v238_v5 = vstv %s237_s17  ;;  %s224_s23 = sld [smem:[#allocation2 + %s223_s16]]  ;;  %v204_v24 = vadd.f32 %v203_v17, %v199_v16  ;;  %s380_s22 = sshll.u32 %s765_s7, 2 }
  0x5d   : > { %v239_v6 = vmul.f32 %v381_v1, %v238_v5  ;;  %v243_v7 = vstv %s242_s27  ;;  %s211_s15 = sld [smem:[#allocation2 + %s210_s19]]  ;;  %s190_s24 = scalar_lea.vmem [#allocation7], %s380_s22 }
  0x5e   : > { %v244_v8 = vmul.f32 %v382_v2, %v243_v7  ;;  %v248_v12 = vstv %s787_s30  ;;  %s229_s5 = sld [smem:[#allocation2 + %s228_s28]]  ;;  %s274_s29 = sshll.u32 %s190_s24, 4  ;;  %s802_s29 = int_to_ptr.vmem [resolvable:$true] %s274_s29 }
  0x5f   : > { %v240_v11 = vadd.f32 %v239_v6, %v235_v4  ;;  %v207_v20 = vstv %s789_s6  ;;  %s392_s17 = sshll.u32 %s595_s12, 6  ;;  %s260_s8 = scalar_lea.sflag [#allocation4], %s765_s7 }
  0x60   : > { %v216_v13 = vstv %s215_s26  ;;  %v208_v25 = vmul.f32 %v382_v2, %v207_v20  ;;  %s807_s6 = scalar_lea.hbm %s858_s2, %s392_s17  ;;  %s517_s26 = scalar_lea.vmem %s802_s29, 64 }
  0x61   : > { %v245_v14 = vadd.f32 %v244_v8, %v240_v11  ;;  %v220_v15 = vstv %s219_s3  ;;  %v217_v18 = vmul.f32 %v216_v13, %v192_v0  ;;  %p518_p8 = scmp.ne.s32.totalorder %s802_s29, %s517_s26  ;;  %s609_s12 = smov [#allocation7]  }
  0x62   : > { %v221_v19 = vmul.f32 %v381_v1, %v220_v15  ;;  %v225_v22 = vstv %s224_s23  ;;  %v209_v28 = vadd.f32 %v208_v25, %v204_v24  ;;  %s521_s18 = sshll.u32 %s609_s12, 4  ;;  %s522_s18 = int_to_ptr.vmem [resolvable:$false] %s521_s18 }
  0x63   : > { %v249_v21 = vadd.f32 %v248_v12, %v245_v14  ;;  %v226_v27 = vmul.f32 %v382_v2, %v225_v22  ;;  %v212_v30 = vstv %s211_s15  ;;  %p519_p0 = pnand %p518_p8, %p871_p13  ;;  %s523_s3 = scalar_lea.vmem %s522_s18, 128 }
  0x64   : > { %v222_v26 = vadd.f32 %v221_v19, %v217_v18  ;;  %v230_v31 = vstv %s229_s5  ;;  %v213_v32 = vadd.f32 %v212_v30, %v209_v28  ;;  %p524_p6 = scmp.lt.s32.totalorder %s802_s29, %s522_s18  ;;  %p525_p1 = scmp.lt.s32.totalorder %s523_s3, %s517_s26 }
  0x65   : > { %v250_v23 = vadd.f32 1e-07, %v249_v21  ;;  %p520_p2 = pneg %p519_p0 }
  0x66   : > { %v227_v29 = vadd.f32 %v226_v27, %v222_v26  ;;  %p526_p7 = por %p525_p1, %p524_p6 }
  0x67   : > { %472 = vrcp.f32 %v250_v23 }
  0x68   : > { %v231_v33 = vadd.f32 %v230_v31, %v227_v29  ;;  %p527_p12 = pnand %p526_p7, %p520_p2 }
  0x71   : > { %v473_v34 = vpop.eup %472 }
  0x72   : > { %v252_v35 = vmul.f32 %v473_v34, %v213_v32  ;;  %v255_v36 = vmul.f32 %v473_v34, %v231_v33 }
  0x74   : > { %v383_v37 = vadd.f32 -1.0, %v252_v35  ;;  %v384_v38 = vadd.f32 -1.0, %v255_v36 }
  0x76   : > { %254 = vst [vmem:[%s190_s24] sm:$0x3] %v383_v37  ;;  %385 = vst [vmem:[%s190_s24 + $0x2] sm:$0x3] %v384_v38 }
  0x77   : > { %530 = shalt.err (!%p527_p12)
}
  0x78   : > { %s531_s16 = scalar_lea.hbm %s807_s6, 64  ;;  %s535_s28 = scalar_lea.hbm %s858_s2, 128 }
  0x79   : > { %p532_p4 = scmp.ne.s32.totalorder %s807_s6, %s531_s16  ;;  %p536_p5 = scmp.lt.u32.totalorder %s807_s6, %s858_s2 }
  0x7a   : > { %p537_p9 = scmp.lt.u32.totalorder %s535_s28, %s531_s16  ;;  %p539_p8 = scmp.lt.u32.totalorder %s531_s16, %s807_s6 }
  0x7b   : > { %p533_p10 = pnand %p532_p4, %p871_p13 }
  0x7c   : > { %p538_p3 = por %p537_p9, %p536_p5 }
  0x7d   : > { %p534_p11 = pneg %p533_p10 }
  0x7e   : > { %p540_p0 = por %p539_p8, %p538_p3 }
  0x80   : > { %p541_p2 = pnand %p540_p0, %p534_p11 }
  0x82   : > { %544 = shalt.err (!%p541_p2)
}
  0x83   : > { %s610_s22 = smov 32   ;;  %s611_s24 = smov 2  }
  0x84   : > { %401 = dma.vmem_to_hbm [thread:$0]  (%p871_p13), %s802_s29, 64, %s807_s6, %s260_s8, %s610_s22, %s610_s22, %s611_s24  }
  0x85 PF: > { %s289_s17 = sand.u32 1, %s583_s9   ;;  %p872_p6 = scmp.ne.s32.totalorder %s866_s21, 0 }
  0x86   : > { %p873_p1 = scmp.ge.s32.totalorder %s603_s14, 2  ;;  %s290_s27 = scalar_lea.sflag [#allocation4], %s289_s17 }
  0x88   : > { %p412_p7 = pnand %p873_p1, %p872_p6 }
  0x8a   : > { %578 = dma.done.wait (!%p412_p7), %s290_s27, 64  }
  0x8b   : > { %580 = vsyncadd (!%p412_p7), %s290_s27, 4294967232  ;;  %s19_s14 = sadd.s32 1, %s603_s14   ;;  %s874_s9 = smov %s587_s10 }
  0x8c   : > { %p16_p12 = scmp.ge.s32.totalorder %s19_s14, 4   ;;  %s875_s10 = smov %s591_s11 }
  0x8d   : > { %s876_s11 = smov %s728_s4  ;;  %s877_s12 = smov %s599_s13 }
  0x8e   : > { %s878_s13 = smov %s880_s25  ;;  %18 = sbr.rel (!%p16_p12) target bundleno = 7 (0x7), region = 81 }
  0x95   :  { %295 = vsyncpa [#allocation3], 1 }
  0x96   :  { %297 = vsyncpa [#allocation3 + $0x1], 1 }
  0x97   :  { %298 = vsyncpa [#allocation4], 1 }
  0x98   :  { %300 = vsyncpa [#allocation4 + $0x1], 1 }
  0x99   :  { %301 = vsyncpa [#allocation5], 1 }
  0x9a   :  { %303 = vsyncpa [#allocation5 + $0x1], 1 }

</bundles_post_ra>
